<compile_context>
chip_gen: v7x
topology: tpu7x:2x2x1
jax: 0.10.0
libtpu: 0.0.40
codegen_flags: <defaults>
</compile_context>

<pallas_src>
import jax
import jax.numpy as jnp
from jax.experimental import pallas as pl
from jax.experimental.pallas import tpu as pltpu


def _round_up(x, m):
    return (x + m - 1) // m * m


_VMEM_CAP = None


def _vmem_capacity_bytes():
    """Physical per-core VMEM, queried once (fallback: conservative 64 MiB)."""
    global _VMEM_CAP
    if _VMEM_CAP is None:
        try:
            _VMEM_CAP = int(pltpu.get_tpu_info().vmem_capacity_bytes)
        except Exception:
            _VMEM_CAP = 64 << 20
    return _VMEM_CAP


# ---------------------------------------------------------------------------
# Kernels
# ---------------------------------------------------------------------------
def _ffn_resident_kernel(x_ref, w1_ref, b1_ref, w2_ref, b2_ref, o_ref):
    # Weights fully VMEM-resident (constant index maps); single grid axis over rows.
    h = jnp.dot(x_ref[...], w1_ref[...], preferred_element_type=jnp.float32)
    h = jnp.maximum(h + b1_ref[...], 0.0)
    y = jnp.dot(h.astype(w2_ref.dtype), w2_ref[...],
                preferred_element_type=jnp.float32)
    o_ref[...] = (y + b2_ref[...]).astype(o_ref.dtype)


def _ffn_streamed_kernel(x_ref, w1_ref, b1_ref, w2_ref, b2_ref, o_ref, acc_ref):
    # Grid = (row tiles "parallel", d_ff chunks "arbitrary").
    k = pl.program_id(1)

    @pl.when(k == 0)
    def _():
        # Fold b2 into the accumulator init (saves a finalize-step VPU add).
        acc_ref[...] = jnp.broadcast_to(b2_ref[...], acc_ref.shape)

    # fc1 chunk on the MXU (bf16 in, f32 accumulate); bias + ReLU on the VPU.
    h = jnp.dot(x_ref[...], w1_ref[...], preferred_element_type=jnp.float32)
    h = jnp.maximum(h + b1_ref[...], 0.0)

    # fc2 chunk, accumulated into the resident f32 scratch.
    acc_ref[...] += jnp.dot(h.astype(w2_ref.dtype), w2_ref[...],
                            preferred_element_type=jnp.float32)

    @pl.when(k == pl.num_programs(1) - 1)
    def _():
        o_ref[...] = acc_ref[...].astype(o_ref.dtype)


# ---------------------------------------------------------------------------
# One-time parameter preparation (call at load time, not per forward pass)
# ---------------------------------------------------------------------------
def prepare_ffn_params(w1, b1, w2, b2, compute_dtype=jnp.bfloat16):
    """w1: (F, D), b1: (F,), w2: (D, F), b2: (D,)  [nn.Linear conventions].

    Returns transposed, bf16-cast, d_ff-zero-padded parameters:
      w1_t: (D, Fp) bf16, b1_p: (1, Fp) f32, w2_t: (Fp, D) bf16, b2_p: (1, D) f32
    """
    F, D = w1.shape
    Fp = _round_up(F, 512) if F >= 512 else _round_up(F, 128)
    w1_t = jnp.pad(jnp.transpose(w1), ((0, 0), (0, Fp - F))).astype(compute_dtype)
    b1_p = jnp.pad(b1, (0, Fp - F)).astype(jnp.float32).reshape(1, Fp)
    w2_t = jnp.pad(jnp.transpose(w2), ((0, Fp - F), (0, 0))).astype(compute_dtype)
    b2_p = b2.astype(jnp.float32).reshape(1, D)
    return w1_t, b1_p, w2_t, b2_p


# ---------------------------------------------------------------------------
# Forward pass
# ---------------------------------------------------------------------------
@jax.jit
def position_wise_ffn(x, w1_t, b1_p, w2_t, b2_p):
    """x: (B, S, D); prepped params from prepare_ffn_params."""
    B, S, D = x.shape
    Fp = w1_t.shape[1]
    M = B * S
    out_dtype = x.dtype
    compute_dtype = w1_t.dtype
    cb = jnp.dtype(compute_dtype).itemsize        # 2 (bf16)
    ob = jnp.dtype(out_dtype).itemsize

    vmem_budget = int(_vmem_capacity_bytes() * 0.8)   # headroom for compiler scratch

    # ---- row-tile candidates (multiple of 16 for bf16 sublane packing) -------
    M_aligned = _round_up(M, 16)
    if M >= 16:
        tm_cands = [c for c in (1024, 512, 256, 128, 64, 32, 16) if c <= M_aligned]
    else:
        tm_cands = [M]          # block == full array dim is always layout-legal

    # Conservative VMEM accounting (double-buffered inputs/outputs + temps).
    def resident_need(tm):
        return (2 * tm * D * cb            # x tile
                + 2 * D * Fp * cb          # W1^T (resident)
                + 2 * Fp * 4               # b1
                + 2 * Fp * D * cb          # W2^T (resident)
                + 2 * D * 4                # b2
                + 2 * tm * D * ob          # out tile
                + tm * Fp * (4 + cb)       # h (f32 + bf16 copy)
                + tm * D * 4)              # y f32 temp

    def streamed_need(tm, tf):
        return (2 * tm * D * cb + 2 * D * tf * cb + 2 * tf * 4
                + 2 * tf * D * cb + 2 * D * 4 + 2 * tm * D * ob
                + tm * D * 4               # f32 accumulator scratch
                + tm * tf * (4 + cb))      # h chunk (f32 + bf16 copy)

    weights_resident = (2 * (2 * D * Fp * cb)) <= vmem_budget // 2
    tm_res = None
    if weights_resident:
        for c in tm_cands:
            if resident_need(c) <= vmem_budget:
                tm_res = c
                break

    x2 = x.reshape(M, D).astype(compute_dtype)

    if tm_res is not None:
        # ---------------- resident-weights path ----------------
        tm = tm_res
        # Keep >= 2 row tiles so v7x's two TensorCores both get work (free here:
        # weights are DMA'd once regardless of the number of row tiles).
        if M_aligned >= 32:
            tm = min(tm, _round_up(-(-M // 2), 16))
        n_m = pl.cdiv(M, tm)
        cost = pl.CostEstimate(
            flops=4 * M * D * Fp, transcendentals=0,
            bytes_accessed=M * D * cb + M * D * ob + 2 * D * Fp * cb)
        out = pl.pallas_call(
            _ffn_resident_kernel,
            out_shape=jax.ShapeDtypeStruct((M, D), out_dtype),
            grid_spec=pltpu.PrefetchScalarGridSpec(
                num_scalar_prefetch=0,
                grid=(n_m,),
                in_specs=[
                    pl.BlockSpec((tm, D), lambda i: (i, 0)),    # token tile
                    pl.BlockSpec((D, Fp), lambda i: (0, 0)),    # W1^T (resident)
                    pl.BlockSpec((1, Fp), lambda i: (0, 0)),    # b1
                    pl.BlockSpec((Fp, D), lambda i: (0, 0)),    # W2^T (resident)
                    pl.BlockSpec((1, D),  lambda i: (0, 0)),    # b2
                ],
                out_specs=pl.BlockSpec((tm, D), lambda i: (i, 0)),
            ),
            compiler_params=pltpu.CompilerParams(
                dimension_semantics=("parallel",),
                vmem_limit_bytes=vmem_budget,
            ),
            cost_estimate=cost,
        )(x2, w1_t, b1_p, w2_t, b2_p)
    else:
        # ---------------- streamed-weights path ----------------
        # tf: multiple-of-128 divisor of Fp; tm pushed toward 1024 so the k-loop
        # stays MXU-bound on v6e (ridge ~700 FLOPs/byte w.r.t. streamed weights).
        tf_cands = [c for c in (2048, 1024, 512, 256, 128) if Fp % c == 0] or [Fp]
        best = None
        for tf_c in tf_cands:
            for tm_c in tm_cands:
                if streamed_need(tm_c, tf_c) <= vmem_budget:
                    score = (min(tm_c, 1024), tf_c)
                    if best is None or score > best[0]:
                        best = (score, tm_c, tf_c)
                    break
        if best is None:        # degenerate fallback (tiny budget / huge D)
            tm, tf = tm_cands[-1], tf_cands[-1]
        else:
            _, tm, tf = best
        n_m = pl.cdiv(M, tm)
        cost = pl.CostEstimate(
            flops=4 * M * D * Fp, transcendentals=0,
            bytes_accessed=M * D * cb + M * D * ob + n_m * 2 * D * Fp * cb)
        out = pl.pallas_call(
            _ffn_streamed_kernel,
            out_shape=jax.ShapeDtypeStruct((M, D), out_dtype),
            grid_spec=pltpu.PrefetchScalarGridSpec(
                num_scalar_prefetch=0,
                grid=(n_m, Fp // tf),
                in_specs=[
                    pl.BlockSpec((tm, D), lambda i, k: (i, 0)),   # token tile
                    pl.BlockSpec((D, tf), lambda i, k: (0, k)),   # W1^T chunk
                    pl.BlockSpec((1, tf), lambda i, k: (0, k)),   # b1 chunk
                    pl.BlockSpec((tf, D), lambda i, k: (k, 0)),   # W2^T chunk
                    pl.BlockSpec((1, D),  lambda i, k: (0, 0)),   # b2
                ],
                out_specs=pl.BlockSpec((tm, D), lambda i, k: (i, 0)),
                scratch_shapes=[pltpu.VMEM((tm, D), jnp.float32)],
            ),
            compiler_params=pltpu.CompilerParams(
                dimension_semantics=("parallel", "arbitrary"),
                vmem_limit_bytes=vmem_budget,
            ),
            cost_estimate=cost,
        )(x2, w1_t, b1_p, w2_t, b2_p)

    return out.reshape(B, S, D)


if __name__ == "__main__":
    # Small, deterministic setup: batch=2, seq=8, d_model=32, d_ff=64.
    B, S, D, F = 2, 8, 32, 64
    key = jax.random.PRNGKey(0)
    kx, kw1, kb1, kw2, kb2 = jax.random.split(key, 5)

    x = jax.random.normal(kx, (B, S, D), dtype=jnp.float32)
    # Parameter shapes follow nn.Linear(D, F) / nn.Linear(F, D).
    w1 = jax.random.normal(kw1, (F, D), dtype=jnp.float32) * (1.0 / D) ** 0.5
    b1 = jax.random.normal(kb1, (F,),   dtype=jnp.float32) * 0.01
    w2 = jax.random.normal(kw2, (D, F), dtype=jnp.float32) * (1.0 / F) ** 0.5
    b2 = jax.random.normal(kb2, (D,),   dtype=jnp.float32) * 0.01

    params = prepare_ffn_params(w1, b1, w2, b2)   # one-time prep (hoisted)
    out = position_wise_ffn(x, *params)
    out = jax.block_until_ready(out)
    assert out.shape == (B, S, D)

    # Reference matching the kernel's mixed-precision path (bf16 MXU in, f32 acc).
    rd = lambda a: a.astype(jnp.bfloat16).astype(jnp.float32)
    hp = jax.lax.Precision.HIGHEST
    h_ref = jnp.maximum(jnp.dot(rd(x.reshape(-1, D)), rd(w1).T, precision=hp) + b1, 0.0)
    y_ref = (jnp.dot(rd(h_ref), rd(w2).T, precision=hp) + b2).reshape(B, S, D)
    assert jnp.allclose(out, y_ref, atol=1e-4, rtol=1e-3), \
        float(jnp.max(jnp.abs(out - y_ref)))

    # Loose sanity check against the pure-f32 PyTorch-equivalent math.
    f32_ref = jnp.maximum(x @ w1.T + b1, 0.0) @ w2.T + b2
    assert jnp.allclose(out, f32_ref, atol=1e-1, rtol=1e-1)

    print("KERNEL_OK")
</pallas_src>

<mosaic_0001>
module attributes {stable_mosaic.version = 11 : i64} {
  func.func @_ffn_resident_kernel(%arg0: i32, %arg1: memref<16x32xbf16, #tpu.memory_space<vmem>>, %arg2: memref<32x128xbf16, #tpu.memory_space<vmem>>, %arg3: memref<1x128xf32, #tpu.memory_space<vmem>>, %arg4: memref<128x32xbf16, #tpu.memory_space<vmem>>, %arg5: memref<1x32xf32, #tpu.memory_space<vmem>>, %arg6: memref<16x32xf32, #tpu.memory_space<vmem>>) attributes {dimension_semantics = [#tpu.dimension_semantics<parallel>], iteration_bounds = array<i64: 1>, scalar_prefetch = 0 : i64, scratch_operands = 0 : i64, tpu.core_type = #tpu.core_type<tc>, window_params = [{transform_indices = @transform_0, window_bounds = array<i64: 16, 32>}, {pipeline_mode = #tpu.pipeline_mode<synchronous>, transform_indices = @transform_1, window_bounds = array<i64: 32, 128>}, {pipeline_mode = #tpu.pipeline_mode<synchronous>, transform_indices = @transform_2, window_bounds = array<i64: 1, 128>}, {pipeline_mode = #tpu.pipeline_mode<synchronous>, transform_indices = @transform_3, window_bounds = array<i64: 128, 32>}, {pipeline_mode = #tpu.pipeline_mode<synchronous>, transform_indices = @transform_4, window_bounds = array<i64: 1, 32>}, {transform_indices = @transform_5, window_bounds = array<i64: 16, 32>}]} {
    %c0 = arith.constant 0 : index
    %c0_0 = arith.constant 0 : index
    %0 = vector.load %arg1[%c0, %c0_0] : memref<16x32xbf16, #tpu.memory_space<vmem>>, vector<16x32xbf16>
    %c0_1 = arith.constant 0 : index
    %c0_2 = arith.constant 0 : index
    %1 = vector.load %arg2[%c0_1, %c0_2] : memref<32x128xbf16, #tpu.memory_space<vmem>>, vector<32x128xbf16>
    %cst = arith.constant dense<0.000000e+00> : vector<16x128xf32>
    %2 = tpu.matmul %0, %1, %cst {dimension_numbers = #tpu.dot_dimension_numbers<[1], [0], [0], [1], [0, 0, 1, 1], [], []>} : vector<16x32xbf16>, vector<32x128xbf16>, vector<16x128xf32> -> vector<16x128xf32>
    %c0_3 = arith.constant 0 : index
    %c0_4 = arith.constant 0 : index
    %3 = vector.load %arg3[%c0_3, %c0_4] : memref<1x128xf32, #tpu.memory_space<vmem>>, vector<1x128xf32>
    %4 = vector.broadcast %3 : vector<1x128xf32> to vector<16x128xf32>
    %5 = arith.addf %2, %4 : vector<16x128xf32>
    %cst_5 = arith.constant 0.000000e+00 : f32
    %6 = vector.broadcast %cst_5 : f32 to vector<16x128xf32>
    %7 = arith.maximumf %5, %6 : vector<16x128xf32>
    %8 = arith.truncf %7 : vector<16x128xf32> to vector<16x128xbf16>
    %c0_6 = arith.constant 0 : index
    %c0_7 = arith.constant 0 : index
    %9 = vector.load %arg4[%c0_6, %c0_7] : memref<128x32xbf16, #tpu.memory_space<vmem>>, vector<128x32xbf16>
    %cst_8 = arith.constant dense<0.000000e+00> : vector<16x32xf32>
    %10 = tpu.matmul %8, %9, %cst_8 {dimension_numbers = #tpu.dot_dimension_numbers<[1], [0], [0], [1], [0, 0, 1, 1], [], []>} : vector<16x128xbf16>, vector<128x32xbf16>, vector<16x32xf32> -> vector<16x32xf32>
    %c0_9 = arith.constant 0 : index
    %c0_10 = arith.constant 0 : index
    %11 = vector.load %arg5[%c0_9, %c0_10] : memref<1x32xf32, #tpu.memory_space<vmem>>, vector<1x32xf32>
    %12 = vector.broadcast %11 : vector<1x32xf32> to vector<16x32xf32>
    %13 = arith.addf %10, %12 : vector<16x32xf32>
    %c0_11 = arith.constant 0 : index
    %c0_12 = arith.constant 0 : index
    %14 = vector.load %arg6[%c0_11, %c0_12] : memref<16x32xf32, #tpu.memory_space<vmem>>, vector<16x32xf32>
    tpu.vector_store %arg6[%c0_11, %c0_12], %13 {strides = array<i32>} : memref<16x32xf32, #tpu.memory_space<vmem>>, vector<16x32xf32>,
    return
  }
  func.func @transform_0(%arg0: i32) -> (i32, i32) {
    %c0_i32 = arith.constant 0 : i32
    %c0_i32_0 = arith.constant 0 : i32
    return %arg0, %c0_i32 : i32, i32
  }
  func.func @transform_1(%arg0: i32) -> (i32, i32) {
    %c0_i32 = arith.constant 0 : i32
    %c0_i32_0 = arith.constant 0 : i32
    %c0_i32_1 = arith.constant 0 : i32
    return %c0_i32, %c0_i32_0 : i32, i32
  }
  func.func @transform_2(%arg0: i32) -> (i32, i32) {
    %c0_i32 = arith.constant 0 : i32
    %c0_i32_0 = arith.constant 0 : i32
    %c0_i32_1 = arith.constant 0 : i32
    return %c0_i32, %c0_i32_0 : i32, i32
  }
  func.func @transform_3(%arg0: i32) -> (i32, i32) {
    %c0_i32 = arith.constant 0 : i32
    %c0_i32_0 = arith.constant 0 : i32
    %c0_i32_1 = arith.constant 0 : i32
    return %c0_i32, %c0_i32_0 : i32, i32
  }
  func.func @transform_4(%arg0: i32) -> (i32, i32) {
    %c0_i32 = arith.constant 0 : i32
    %c0_i32_0 = arith.constant 0 : i32
    %c0_i32_1 = arith.constant 0 : i32
    return %c0_i32, %c0_i32_0 : i32, i32
  }
  func.func @transform_5(%arg0: i32) -> (i32, i32) {
    %c0_i32 = arith.constant 0 : i32
    %c0_i32_0 = arith.constant 0 : i32
    return %arg0, %c0_i32 : i32, i32
  }
}

</mosaic_0001>

<bundles_post_ra>
// kernel: position_wise_ffn.1
= control target key start
LH: loop header
LB: loop body
LE: loop exit
PB: predicated region body
PF: predicated region fallthrough
CT: control target
= control target key end

     0   :  { %v324_v1 = vmov 0.0   ;;  %vm325_vm0 = vmmov 0   ;;  %vm52_vm1 = vcmask 261120   ;;  %s413_s0 = inlined_call_operand.vmem [shape: bf16[16,32], index: 0, kind: input, shape index: {}]   ;;  %s414_s1 = inlined_call_operand.vmem [shape: bf16[32,128], index: 1, kind: input, shape index: {}]   ;;  %s415_s2 = inlined_call_operand.vmem [shape: f32[1,128], index: 2, kind: input, shape index: {}]   ;;  %s416_s3 = inlined_call_operand.vmem [shape: bf16[128,32], index: 3, kind: input, shape index: {}]   ;;  %s417_s4 = inlined_call_operand.vmem [shape: f32[1,32], index: 4, kind: input, shape index: {}]   ;;  %s418_s5 = inlined_call_operand.hbm [shape: f32[16,32], index: 5, kind: output, shape index: {}]  }
   0x1   :  { %v289_v0 = vld [vmem:[%s414_s1] sm:$0xff]   ;;  %256 = vmatprep.subr.bf16.mxu0 %v324_v1  ;;  %264 = vmatprep.subr.bf16.mxu1 %v324_v1  ;;  %v290_v2 = vld [vmem:[%s414_s1 + $0x8] sm:$0xff]   ;;  %v294_v6 = vld [vmem:[%s416_s3 + $0x10] sm:$0xff]  }
   0x2   :  { %257 = vmatpush3.bf16.msra.mxu0 %v289_v0  ;;  %260 = vmatprep.mubr.msk.bf16.mxu0 %vm325_vm0, %v324_v1  ;;  %v292_v3 = vld [vmem:[%s416_s3] sm:$0xff]   ;;  %v293_v5 = vld [vmem:[%s416_s3 + $0x8] sm:$0xff]  }
   0x3   :  { %258 = vmatprep.subr.bf16.mxu0 %v324_v1  ;;  %280 = vmatprep.mubr.msk.bf16.mxu1 %vm325_vm0, %v324_v1  ;;  %v291_v4 = vld [vmem:[%s413_s0] sm:$0xff]  }
   0x4   :  { %265 = vmatpush3.bf16.msra.mxu1 %v292_v3 }
   0x5   :  { %266 = vmatprep.subr.bf16.mxu1 %v324_v1 }
   0x6   :  { %259 = vmatpush3.bf16.msra.mxu0 %v290_v2 }
   0x8   :  { %267 = vmatpush3.bf16.msra.mxu1 %v293_v5 }
   0x9   :  { %261 = vmatmul.mubr.msk.bf16.vlgmr.msra.gmra.mrb[0].mxu0 %vm52_vm1, %v291_v4  ;;  %268 = vmatprep.subr.bf16.mxu1 %v324_v1 }
   0xa   :  { %10 = vsyncpa [#allocation3], 0  ;;  %v295_v7 = vld [vmem:[%s416_s3 + $0x18] sm:$0xff]   ;;  %v296_v8 = vld [vmem:[%s416_s3 + $0x20] sm:$0xff]  }
   0xb   :  { %v297_v9 = vld [vmem:[%s416_s3 + $0x28] sm:$0xff]   ;;  %v298_v10 = vld [vmem:[%s416_s3 + $0x30] sm:$0xff]   ;;  %v299_v11 = vld [vmem:[%s416_s3 + $0x38] sm:$0xff]   ;;  %s326_s3 = smov [#allocation2]  }
   0xc   :  { %269 = vmatpush3.bf16.msra.mxu1 %v294_v6  ;;  %v230_v12 = vld [vmem:[%s415_s2] ss:$0 sm:$0xff]  ;;  %s219_s17 = sshll.u32 %s326_s3, 4  ;;  %s220_s17 = int_to_ptr.vmem [resolvable:$true] %s219_s17 }
   0xd   :  { %270 = vmatprep.subr.bf16.mxu1 %v324_v1  ;;  %v235_v22 = vld [vmem:[%s417_s4] ss:$0 sm:$0xff]  ;;  %s300_s2 = scalar_lea.vmem %s220_s17, 256  ;;  %p305_p1 = scmp.lt.s32.totalorder %s220_s17, %s220_s17 }
   0xe   :  { %p301_p0 = scmp.ne.s32.totalorder %s220_s17, %s300_s2  ;;  %p306_p2 = scmp.lt.s32.totalorder %s300_s2, %s300_s2 }
  0x10   :  { %271 = vmatpush3.bf16.msra.mxu1 %v295_v7  ;;  %p307_p3 = por %p306_p2, %p305_p1 }
  0x11   :  { %272 = vmatprep.subr.bf16.mxu1 %v324_v1 }
  0x12   :  { %p308_p4 = pnand %p307_p3, %p301_p0 }
  0x14   :  { %273 = vmatpush3.bf16.msra.mxu1 %v296_v8 }
  0x15   :  { %274 = vmatprep.subr.bf16.mxu1 %v324_v1 }
  0x18   :  { %275 = vmatpush3.bf16.msra.mxu1 %v297_v9 }
  0x19   :  { %276 = vmatprep.subr.bf16.mxu1 %v324_v1 }
  0x1c   :  { %277 = vmatpush3.bf16.msra.mxu1 %v298_v10 }
  0x1d   :  { %278 = vmatprep.subr.bf16.mxu1 %v324_v1 }
  0x20   :  { %279 = vmatpush3.bf16.msra.mxu1 %v299_v11 }
  0xdc   :  { %v90_v13 = vpop.f32.mrb[0].mxu0 }
  0xdd   :  { %v91_v14 = vadd.f32 %v230_v12, %v90_v13  ;;  %v262_v15 = vpop.f32.mrb[1].mxu0 }
  0xde   :  { %v93_v16 = vpop.f32.mrb[2].mxu0 }
  0xdf   :  { %v94_v17 = vadd.f32 %v230_v12, %v93_v16  ;;  %v263_v18 = vpop.f32.mrb[3].mxu0  ;;  %v97_v19 = vmax.f32 %v91_v14, 0.0 }
  0xe1   :  { %v98_v20 = vmax.f32 %v94_v17, 0.0 }
  0xe3   :  { %v99_v21 = vpack.c.bf16 %v98_v20, %v97_v19 }
  0xe5   :  { %281 = vmatmul.mubr.bf16.vlgmr.msra.gmra.mrb[0].mxu1 %v99_v21 }
 0x1b8   :  { %v205_v23 = vpop.f32.mrb[0].mxu1 }
 0x1b9   :  { %v206_v24 = vadd.f32 %v235_v22, %v205_v23  ;;  %v282_v25 = vpop.f32.mrb[1].mxu1 }
 0x1ba   :  { %v208_v26 = vpop.f32.mrb[2].mxu1 }
 0x1bb   :  { %212 = vst.msk [vmem:[#allocation2] sm:$0xff] %vm52_vm1, %v206_v24  ;;  %v209_v27 = vadd.f32 %v235_v22, %v208_v26  ;;  %v283_v28 = vpop.f32.mrb[3].mxu1 }
 0x1bd   :  { %213 = vst.msk [vmem:[#allocation2 + $0x8] sm:$0xff] %vm52_vm1, %v209_v27 }
 0x1be   :  { %311 = shalt.err (!%p308_p4)
}
 0x1bf   :  { %s312_s19 = scalar_lea.hbm %s418_s5, 256 }
 0x1c0   :  { %p313_p5 = scmp.ne.s32.totalorder %s418_s5, %s312_s19  ;;  %p316_p6 = scmp.lt.u32.totalorder %s312_s19, %s418_s5 }
 0x1c2   :  { %p318_p7 = pnand %p316_p6, %p313_p5 }
 0x1c4   :  { %321 = shalt.err (!%p318_p7)
}
 0x1c5   :  { %s327_s24 = smov 128   ;;  %s328_s25 = smov 8  }
 0x1c6   :  { %225 = dma.vmem_to_hbm [thread:$0]  %s220_s17, 256, %s418_s5, [#allocation3], %s327_s24, %s327_s24, %s328_s25  }
 0x1c7   :  { %322 = dma.done.wait [#allocation3], 256  }
 0x1c8   :  { %323 = vsyncadd [#allocation3], 4294967040 }
 0x1c9   :  { %229 = vsyncpa [#allocation3], 1 }

</bundles_post_ra>
